<compile_context>
chip_gen: v7x
topology: tpu7x:2x2x1
jax: 0.10.0
libtpu: 0.0.40
codegen_flags: <defaults>
</compile_context>

<pallas_src>
import jax
import jax.numpy as jnp
from jax.experimental import pallas as pl
from jax.experimental.pallas import tpu as pltpu


def _rope_kernel(xe_ref, xo_ref, cos_ref, sin_ref, o_ref):
    # xe_ref / xo_ref: (TILE_S, D/2) even / odd lanes of x (batch dim squeezed).
    # cos_ref / sin_ref: (TILE_S, D/2) float32, precomputed in the wrapper.
    # o_ref: (TILE_S, D) half-split output.
    d_half = cos_ref.shape[-1]
    cos = cos_ref[...]
    sin = sin_ref[...]
    xe = xe_ref[...].astype(jnp.float32)
    xo = xo_ref[...].astype(jnp.float32)
    # Two direct slice stores; no concatenate temporary.
    o_ref[:, :d_half] = (xe * cos - xo * sin).astype(o_ref.dtype)
    o_ref[:, d_half:] = (xo * cos + xe * sin).astype(o_ref.dtype)


def make_pe(embedding_dim: int, seq_len: int) -> jnp.ndarray:
    """Deterministic buffer matching the module's __init__ (no checkpoint)."""
    pos = jnp.arange(seq_len, dtype=jnp.float32)[:, None]
    theta = 1.0 / (
        10000.0
        ** (jnp.arange(0, embedding_dim, 2, dtype=jnp.float32) / embedding_dim)
    )
    return pos * theta  # (seq_len, embedding_dim // 2)


def _pick_tile_s(S: int, D: int, dtype) -> int:
    """Largest seq tile whose double-buffered footprint fits an 8 MiB budget."""
    itemsize = jnp.dtype(dtype).itemsize
    budget = 8 * 1024 * 1024  # conservative: under v5e's 16 MiB scoped default
    d_half = D // 2

    def footprint(t):
        x_bytes = 2 * t * d_half * itemsize   # x_even + x_odd blocks
        out_bytes = t * D * itemsize          # output block
        cs_bytes = 2 * t * d_half * 4         # cos + sin (f32)
        return 2 * (x_bytes + out_bytes + cs_bytes)  # double-buffered

    if S <= 8:
        return S  # full dim; satisfies the "equal to array dim" rule
    tile = min(S, 512)
    tile = max(8, (tile // 8) * 8)  # keep sublane dim a multiple of 8
    while tile > 8 and footprint(tile) > budget:
        tile = max(8, ((tile // 2) // 8) * 8)
    return tile


def rotate_position_encoding(x: jnp.ndarray, pe: jnp.ndarray, *, tile_s=None):
    B, S, D = x.shape
    assert D % 2 == 0, "embedding_dim must be even"
    d_half = D // 2

    # Batch-invariant angle math, forced to f32 regardless of pe dtype.
    pe_f32 = pe.astype(jnp.float32)
    cos = jnp.cos(pe_f32)  # (S, D/2)
    sin = jnp.sin(pe_f32)  # (S, D/2)

    # Even/odd de-interleave: layout-only plumbing done once by XLA
    # (single fusion: one read of x, two half-sized writes).
    x_even = x[:, :, 0::2]  # (B, S, D/2)
    x_odd = x[:, :, 1::2]   # (B, S, D/2)

    if tile_s is None:
        tile_s = _pick_tile_s(S, D, x.dtype)
    n_s = pl.cdiv(S, tile_s)
    grid = (n_s, B)  # B innermost so cos/sin blocks are reused across batch

    return pl.pallas_call(
        _rope_kernel,
        out_shape=jax.ShapeDtypeStruct((B, S, D), x.dtype),
        grid=grid,
        in_specs=[
            # None squeezes the batch dim out of the kernel Ref.
            pl.BlockSpec((None, tile_s, d_half), lambda s, b: (b, s, 0)),
            pl.BlockSpec((None, tile_s, d_half), lambda s, b: (b, s, 0)),
            pl.BlockSpec((tile_s, d_half), lambda s, b: (s, 0)),
            pl.BlockSpec((tile_s, d_half), lambda s, b: (s, 0)),
        ],
        out_specs=pl.BlockSpec((None, tile_s, D), lambda s, b: (b, s, 0)),
        compiler_params=pltpu.CompilerParams(
            dimension_semantics=("parallel", "parallel"),
        ),
    )(x_even, x_odd, cos, sin)


def _reference(x, pe):
    cos = jnp.cos(pe.astype(jnp.float32))
    sin = jnp.sin(pe.astype(jnp.float32))
    even = x[:, :, 0::2].astype(jnp.float32)
    odd = x[:, :, 1::2].astype(jnp.float32)
    out = jnp.concatenate(
        [even * cos - odd * sin, odd * cos + even * sin], axis=-1
    )
    return out.astype(x.dtype)


if __name__ == "__main__":
    key = jax.random.PRNGKey(0)
    k1, k2 = jax.random.split(key)

    # Config 1: small shape matching the toy module config (B=2, S=8, D=32).
    B, S, D = 2, 8, 32
    x = jax.random.normal(k1, (B, S, D), dtype=jnp.float32)
    pe = make_pe(D, S)
    out = jax.block_until_ready(rotate_position_encoding(x, pe))
    ref = _reference(x, pe)
    assert out.shape == (B, S, D)
    assert out.dtype == x.dtype
    assert jnp.allclose(out, ref, atol=1e-5, rtol=1e-5)

    # Config 2: lane-dense shape (D/2 >= 128) exercising the tiled, pipelined path.
    B2, S2, D2 = 2, 256, 256
    x2 = jax.random.normal(k2, (B2, S2, D2), dtype=jnp.float32)
    pe2 = make_pe(D2, S2)
    out2 = jax.block_until_ready(rotate_position_encoding(x2, pe2, tile_s=128))
    ref2 = _reference(x2, pe2)
    assert out2.shape == (B2, S2, D2)
    assert jnp.allclose(out2, ref2, atol=1e-5, rtol=1e-5)

    print("KERNEL_OK")
</pallas_src>

<mosaic_0001>
module attributes {stable_mosaic.version = 11 : i64} {
  func.func @_rope_kernel(%arg0: i32, %arg1: i32, %arg2: memref<1x8x16xf32, #tpu.memory_space<vmem>>, %arg3: memref<1x8x16xf32, #tpu.memory_space<vmem>>, %arg4: memref<8x16xf32, #tpu.memory_space<vmem>>, %arg5: memref<8x16xf32, #tpu.memory_space<vmem>>, %arg6: memref<1x8x32xf32, #tpu.memory_space<vmem>>) attributes {dimension_semantics = [#tpu.dimension_semantics<parallel>, #tpu.dimension_semantics<parallel>], iteration_bounds = array<i64: 1, 2>, scalar_prefetch = 0 : i64, scratch_operands = 0 : i64, tpu.core_type = #tpu.core_type<tc>, window_params = [{transform_indices = @transform_0, window_bounds = array<i64: 1, 8, 16>}, {transform_indices = @transform_1, window_bounds = array<i64: 1, 8, 16>}, {transform_indices = @transform_2, window_bounds = array<i64: 8, 16>}, {transform_indices = @transform_3, window_bounds = array<i64: 8, 16>}, {transform_indices = @transform_4, window_bounds = array<i64: 1, 8, 32>}]} {
    %c0 = arith.constant 0 : index
    %c0_0 = arith.constant 0 : index
    %0 = vector.load %arg4[%c0, %c0_0] : memref<8x16xf32, #tpu.memory_space<vmem>>, vector<8x16xf32>
    %c0_1 = arith.constant 0 : index
    %c0_2 = arith.constant 0 : index
    %1 = vector.load %arg5[%c0_1, %c0_2] : memref<8x16xf32, #tpu.memory_space<vmem>>, vector<8x16xf32>
    %c0_3 = arith.constant 0 : index
    %c0_4 = arith.constant 0 : index
    %c0_5 = arith.constant 0 : index
    %2 = vector.load %arg2[%c0_3, %c0_4, %c0_5] : memref<1x8x16xf32, #tpu.memory_space<vmem>>, vector<1x8x16xf32>
    %3 = vector.shape_cast %2 : vector<1x8x16xf32> to vector<8x16xf32>
    %c0_6 = arith.constant 0 : index
    %c0_7 = arith.constant 0 : index
    %c0_8 = arith.constant 0 : index
    %4 = vector.load %arg3[%c0_6, %c0_7, %c0_8] : memref<1x8x16xf32, #tpu.memory_space<vmem>>, vector<1x8x16xf32>
    %5 = vector.shape_cast %4 : vector<1x8x16xf32> to vector<8x16xf32>
    %6 = arith.mulf %3, %0 : vector<8x16xf32>
    %7 = arith.mulf %5, %1 : vector<8x16xf32>
    %8 = arith.subf %6, %7 : vector<8x16xf32>
    %c0_9 = arith.constant 0 : index
    %c0_10 = arith.constant 0 : index
    %c0_11 = arith.constant 0 : index
    %9 = vector.load %arg6[%c0_9, %c0_10, %c0_11] : memref<1x8x32xf32, #tpu.memory_space<vmem>>, vector<1x8x16xf32>
    %10 = vector.shape_cast %9 : vector<1x8x16xf32> to vector<8x16xf32>
    %11 = vector.shape_cast %8 : vector<8x16xf32> to vector<1x8x16xf32>
    tpu.vector_store %arg6[%c0_9, %c0_10, %c0_11], %11 {strides = array<i32>} : memref<1x8x32xf32, #tpu.memory_space<vmem>>, vector<1x8x16xf32>,
    %12 = arith.mulf %5, %0 : vector<8x16xf32>
    %13 = arith.mulf %3, %1 : vector<8x16xf32>
    %14 = arith.addf %12, %13 : vector<8x16xf32>
    %c0_12 = arith.constant 0 : index
    %c0_13 = arith.constant 0 : index
    %c16 = arith.constant 16 : index
    %15 = vector.load %arg6[%c0_12, %c0_13, %c16] : memref<1x8x32xf32, #tpu.memory_space<vmem>>, vector<1x8x16xf32>
    %16 = vector.shape_cast %15 : vector<1x8x16xf32> to vector<8x16xf32>
    %17 = vector.shape_cast %14 : vector<8x16xf32> to vector<1x8x16xf32>
    tpu.vector_store %arg6[%c0_12, %c0_13, %c16], %17 {strides = array<i32>} : memref<1x8x32xf32, #tpu.memory_space<vmem>>, vector<1x8x16xf32>,
    return
  }
  func.func @transform_0(%arg0: i32, %arg1: i32) -> (i32, i32, i32) {
    %c0_i32 = arith.constant 0 : i32
    %c0_i32_0 = arith.constant 0 : i32
    return %arg1, %arg0, %c0_i32 : i32, i32, i32
  }
  func.func @transform_1(%arg0: i32, %arg1: i32) -> (i32, i32, i32) {
    %c0_i32 = arith.constant 0 : i32
    %c0_i32_0 = arith.constant 0 : i32
    return %arg1, %arg0, %c0_i32 : i32, i32, i32
  }
  func.func @transform_2(%arg0: i32, %arg1: i32) -> (i32, i32) {
    %c0_i32 = arith.constant 0 : i32
    %c0_i32_0 = arith.constant 0 : i32
    return %arg0, %c0_i32 : i32, i32
  }
  func.func @transform_3(%arg0: i32, %arg1: i32) -> (i32, i32) {
    %c0_i32 = arith.constant 0 : i32
    %c0_i32_0 = arith.constant 0 : i32
    return %arg0, %c0_i32 : i32, i32
  }
  func.func @transform_4(%arg0: i32, %arg1: i32) -> (i32, i32, i32) {
    %c0_i32 = arith.constant 0 : i32
    %c0_i32_0 = arith.constant 0 : i32
    return %arg1, %arg0, %c0_i32 : i32, i32, i32
  }
}

</mosaic_0001>

<bundles_post_ra>
// kernel: tpu_custom_call.1
= control target key start
LH: loop header
LB: loop body
LE: loop exit
PB: predicated region body
PF: predicated region fallthrough
CT: control target
= control target key end

     0   :  { %s1028_s0 = inlined_call_operand.hbm [shape: f32[2,8,16], index: 0, kind: input, shape index: {}]   ;;  %s1029_s1 = inlined_call_operand.hbm [shape: f32[2,8,16], index: 1, kind: input, shape index: {}]   ;;  %s1030_s2 = inlined_call_operand.hbm [shape: f32[8,16], index: 2, kind: input, shape index: {}]   ;;  %s1031_s3 = inlined_call_operand.vmem [shape: f32[8,16], index: 3, kind: input, shape index: {}]   ;;  %s1032_s4 = inlined_call_operand.hbm [shape: f32[2,8,32], index: 4, kind: output, shape index: {}]  }
   0x1   :  { %1039 = sst [smem:[#allocation15_spill]] %s1030_s2 }
   0x2   :  { %9 = vsyncpa [#allocation3], 0 }
   0x3   :  { %11 = vsyncpa [#allocation3 + $0x1], 0 }
   0x4   :  { %12 = vsyncpa [#allocation6], 0 }
   0x5   :  { %14 = vsyncpa [#allocation6 + $0x1], 0 }
   0x6   :  { %15 = vsyncpa [#allocation4], 0 }
   0x7   :  { %17 = vsyncpa [#allocation4 + $0x1], 0  ;;  %s777_s15 = smov 0   ;;  %s779_s16 = smov 0  }
   0x8   :  { %s781_s17 = smov 0   ;;  %s783_s18 = smov 0  }
   0x9   :  { %s785_s19 = smov 0   ;;  %s787_s20 = smov 0  }
   0xa LB: > { %1040 = sst [smem:[#allocation13_spill]] %s741_s19  ;;  %s808_s21 = sadd.s32 4294967295, %s745_s20   ;;  %s745_s20 = sphi %s787_s20, %s23_s20   ;;  %s741_s19 = sphi %s785_s19, %s1060_s19   ;;  %s737_s18 = sphi %s783_s18, %s1059_s18   ;;  %s733_s17 = sphi %s781_s17, %s1063_s17   ;;  %s729_s16 = sphi %s779_s16, %s1062_s16   ;;  %s725_s15 = sphi %s777_s15, %s1061_s15  }
   0xb   : > { %s470_s22 = sadd.s32 4294967294, %s745_s20   ;;  %p57_p0 = scmp.ne.s32.totalorder %s729_s16, %s725_s15 }
   0xc   : > { %p1033_p1 = scmp.eq.s32.totalorder %s808_s21, 0  ;;  %p169_p3 = scmp.eq.s32.totalorder %s470_s22, 1 }
   0xd   : > { %p471_p5 = scmp.ge.s32.totalorder %s745_s20, 1  ;;  %p176_p7 = scmp.lt.s32.totalorder %s745_s20, 3 }
   0xe   : > { %p817_p4 = por %p1033_p1, %p57_p0  ;;  %p822_p6 = por %p169_p3, %p57_p0 }
   0xf   : > { %p827_p8 = pnand %p471_p5, %p176_p7  ;;  %s747_s26 = smov [#allocation7]  }
  0x10   : > { %s1041_s23 = scalar_select %p817_p4, 1, 0 }
  0x11   : > { %s1042_s24 = scalar_select %p822_p6, 1, 0 }
  0x12   : > { %s1043_s25 = scalar_select %p827_p8, 1, 0 }
  0x13   : > { %s191_s27 = sshll.u32 %s747_s26, 4  ;;  %p498_p10 = pneg %p827_p8  ;;  %s192_s27 = int_to_ptr.vmem [resolvable:$true] %s191_s27 }
  0x14   : > { %s32_s29 = sadd.s32 1, %s741_s19  ;;  %s44_s30 = sadd.s32 1, %s733_s17 }
  0x15   : > { %p836_p11 = pnand %p498_p10, %p1033_p1  ;;  %p842_p12 = scmp.ge.s32.totalorder %s32_s29, 2 }
  0x16   : > { %s1046_s2 = sld [smem:[#allocation15_spill]] }
  0x17   : > { %s1045_s5 = scalar_select %p842_p12, 1, 0 }
  0x18   : > { %p569_p0 = pneg %p836_p11 }
  0x1c   : > { %s567_s8 = scalar_lea.hbm %s1046_s2, 128 }
  0x1d   : > { %p568_p13 = scmp.ne.s32.totalorder %s1046_s2, %s567_s8  ;;  %p574_p7 = scmp.lt.u32.totalorder %s567_s8, %s1046_s2 }
  0x1f   : > { %p570_p3 = pnand %p569_p0, %p568_p13 }
  0x21   : > { %p571_p5 = pneg %p570_p3 }
  0x23   : > { %p576_p10 = pnand %p574_p7, %p571_p5 }
  0x25   : > { %579 = shalt.err (!%p576_p10)
}
  0x26   : > { %s580_s13 = scalar_lea.vmem %s192_s27, 128  ;;  %p588_p6 = scmp.lt.s32.totalorder %s192_s27, %s192_s27 }
  0x27   : > { %p581_p9 = scmp.ne.s32.totalorder %s192_s27, %s580_s13  ;;  %p589_p4 = scmp.lt.s32.totalorder %s580_s13, %s580_s13 }
  0x29   : > { %p583_p1 = pnand %p581_p9, %p569_p0  ;;  %p590_p8 = por %p589_p4, %p588_p6 }
  0x2b   : > { %p584_p2 = pneg %p583_p1 }
  0x2d   : > { %p591_p12 = pnand %p590_p8, %p584_p2 }
  0x2f   : > { %594 = shalt.err (!%p591_p12)
}
  0x30   : > { %501 = dma.hbm_to_vmem [thread:$0]  (!%p836_p11), %s1046_s2, 128, %s192_s27, [#allocation6]  }
  0x31   : > { %p1047_p1 = scmp.ne.s32.totalorder %s1045_s5, 0  ;;  %p51_p2 = scmp.ne.s32.totalorder %s733_s17, %s729_s16 }
  0x32   : > { %p52_p4 = scmp.eq.s32.totalorder %s745_s20, 0  ;;  %p514_p6 = scmp.lt.s32.totalorder %s745_s20, 2 }
  0x33   : > { %s1065_s29 = smov (%p1047_p1, %s32_s29), 0  ;;  %p1049_p12 = scmp.eq.s32.totalorder %s808_s21, 1 }
  0x34   : > { %1048 = sst [smem:[#allocation14_spill]] %s1065_s29  ;;  %s39_s26 = ssub.s32 %s741_s19, %s1065_s29 }
  0x35   : > { %p42_p8 = scmp.eq.s32.totalorder %s39_s26, 0  ;;  %p53_p9 = por %p52_p4, %p51_p2 }
  0x36   : > { %p874_p13 = por %p1049_p12, %p51_p2  ;;  %s209_s6 = sand.u32 1, %s733_s17  }
  0x37   : > { %s882_s7 = scalar_select %p42_p8, %s733_s17, %s44_s30  }
  0x38   : > { %s1050_s28 = scalar_select %p874_p13, 1, 0 }
  0x39   : > { %s884_s27 = sshll.u32 %s209_s6, 3  ;;  %s476_s5 = sshll.u32 %s741_s19, 7 }
  0x3a   : > { %s890_s10 = scalar_lea.hbm %s1028_s0, %s476_s5  ;;  %s213_s11 = scalar_lea.vmem [#allocation2], %s884_s27 }
  0x3b   : > { %s221_s12 = sshll.u32 %s213_s11, 4  ;;  %p895_p11 = pnand %p514_p6, %p53_p9  ;;  %s893_s12 = int_to_ptr.vmem [resolvable:$true] %s221_s12 }
  0x3c   : > { %s902_s22 = scalar_lea.hbm %s1029_s1, %s476_s5  ;;  %s228_s26 = sand.u32 1, %s745_s20  }
  0x3d   : > { %s210_s8 = scalar_lea.sflag [#allocation3], %s209_s6  ;;  %s595_s9 = scalar_lea.hbm %s890_s10, 128 }
  0x3e   : > { %p596_p0 = scmp.ne.s32.totalorder %s890_s10, %s595_s9  ;;  %p597_p3 = pneg %p895_p11 }
  0x3f   : > { %s600_s29 = scalar_lea.hbm %s1028_s0, 256  ;;  %p601_p10 = scmp.lt.u32.totalorder %s890_s10, %s1028_s0 }
  0x40   : > { %p598_p5 = pnand %p597_p3, %p596_p0  ;;  %p602_p1 = scmp.lt.u32.totalorder %s600_s29, %s595_s9 }
  0x41   : > { %p604_p4 = scmp.lt.u32.totalorder %s595_s9, %s890_s10 }
  0x42   : > { %p599_p7 = pneg %p598_p5  ;;  %p603_p2 = por %p602_p1, %p601_p10 }
  0x44   : > { %p605_p6 = por %p604_p4, %p603_p2 }
  0x46   : > { %p606_p8 = pnand %p605_p6, %p599_p7 }
  0x48   : > { %609 = shalt.err (!%p606_p8)
}
  0x49   : > { %s610_s6 = scalar_lea.vmem %s893_s12, 128  ;;  %s748_s2 = smov [#allocation2]  }
  0x4a   : > { %p611_p9 = scmp.ne.s32.totalorder %s893_s12, %s610_s6  ;;  %s615_s5 = sshll.u32 %s748_s2, 4  ;;  %s616_s5 = int_to_ptr.vmem [resolvable:$false] %s615_s5 }
  0x4b   : > { %s617_s19 = scalar_lea.vmem %s616_s5, 256  ;;  %p618_p5 = scmp.lt.s32.totalorder %s893_s12, %s616_s5 }
  0x4c   : > { %p613_p12 = pnand %p611_p9, %p597_p3  ;;  %p619_p10 = scmp.lt.s32.totalorder %s617_s19, %s610_s6 }
  0x4e   : > { %p614_p0 = pneg %p613_p12  ;;  %p620_p1 = por %p619_p10, %p618_p5 }
  0x50   : > { %p621_p2 = pnand %p620_p1, %p614_p0 }
  0x52   : > { %624 = shalt.err (!%p621_p2)
}
  0x53   : > { %505 = dma.hbm_to_vmem [thread:$0]  (!%p895_p11), %s890_s10, 128, %s893_s12, %s210_s8  }
  0x54   : > { %s232_s29 = scalar_lea.vmem [#allocation5], %s884_s27  ;;  %s229_s9 = scalar_lea.sflag [#allocation6], %s228_s26 }
  0x55   : > { %s240_s14 = sshll.u32 %s232_s29, 4  ;;  %s625_s11 = scalar_lea.hbm %s902_s22, 128  ;;  %s241_s14 = int_to_ptr.vmem [resolvable:$true] %s240_s14 }
  0x56   : > { %p626_p7 = scmp.ne.s32.totalorder %s902_s22, %s625_s11  ;;  %s630_s2 = scalar_lea.hbm %s1029_s1, 256 }
  0x57   : > { %p631_p8 = scmp.lt.u32.totalorder %s902_s22, %s1029_s1  ;;  %p632_p9 = scmp.lt.u32.totalorder %s630_s2, %s625_s11 }
  0x58   : > { %p628_p4 = pnand %p626_p7, %p597_p3  ;;  %p634_p0 = scmp.lt.u32.totalorder %s625_s11, %s902_s22 }
  0x59   : > { %p633_p12 = por %p632_p9, %p631_p8 }
  0x5a   : > { %p629_p6 = pneg %p628_p4 }
  0x5b   : > { %p635_p5 = por %p634_p0, %p633_p12 }
  0x5d   : > { %p636_p10 = pnand %p635_p5, %p629_p6 }
  0x5f   : > { %639 = shalt.err (!%p636_p10)
}
  0x60   : > { %s640_s27 = scalar_lea.vmem %s241_s14, 128  ;;  %s749_s10 = smov [#allocation5]  }
  0x61   : > { %p641_p1 = scmp.ne.s32.totalorder %s241_s14, %s640_s27  ;;  %s645_s12 = sshll.u32 %s749_s10, 4  ;;  %s646_s12 = int_to_ptr.vmem [resolvable:$false] %s645_s12 }
  0x62   : > { %s647_s26 = scalar_lea.vmem %s646_s12, 256  ;;  %p648_p4 = scmp.lt.s32.totalorder %s241_s14, %s646_s12 }
  0x63   : > { %p643_p2 = pnand %p641_p1, %p597_p3  ;;  %p649_p13 = scmp.lt.s32.totalorder %s647_s26, %s640_s27 }
  0x65   : > { %p644_p7 = pneg %p643_p2  ;;  %p650_p8 = por %p649_p13, %p648_p4 }
  0x67   : > { %p651_p9 = pnand %p650_p8, %p644_p7 }
  0x69   : > { %654 = shalt.err (!%p651_p9)
}
  0x6a   : > { %508 = dma.hbm_to_vmem [thread:$0]  (!%p895_p11), %s902_s22, 128, %s241_s14, %s229_s9  }
  0x6b   : > { %p1052_p6 = scmp.ne.s32.totalorder %s1043_s25, 0 }
  0x6c   : > { %s955_s8 = sand.u32 (!%p1052_p6), 1, %s729_s16   ;;  %p1053_p3 = scmp.ne.s32.totalorder (!%p1052_p6), %s1041_s23, 0 }
  0x6d   : > { %249 = sbr.rel (%p1052_p6) target bundleno = 259 (0x103), region = 36  ;;  %s480_s29 = sshll.u32 (!%p1052_p6), %s955_s8, 3 }
  0x6e   : > { %s252_s11 = scalar_lea.sflag (!%p1052_p6), [#allocation3], %s955_s8  ;;  %s255_s13 = scalar_lea.vmem (!%p1052_p6), [#allocation2], %s480_s29 }
  0x74   : > { %708 = dma.done.wait (%p1053_p3), %s252_s11, 128  }
  0x75   : > { %710 = vsyncadd (%p1053_p3), %s252_s11, 4294967168  ;;  %s260_s30 = sand.u32 1, %s808_s21   ;;  %s264_s25 = scalar_lea.vmem [#allocation5], %s480_s29 }
  0x76   : > { %s261_s22 = scalar_lea.sflag [#allocation6], %s260_s30 }
  0x77   : > { %712 = dma.done.wait (%p1053_p3), %s261_s22, 128  }
  0x78   : > { %714 = vsyncadd (%p1053_p3), %s261_s22, 4294967168  ;;  %p1054_p13 = scmp.eq.s32.totalorder %s808_s21, 0 }
  0x7a   : > { %716 = dma.done.wait (%p1054_p13), [#allocation6], 128   ;;  %p1055_p11 = pmov %p1054_p13 }
  0x7b   : > { %v306_v0 = vld [vmem:[#allocation7] sm:$0xff]  ;;  %v309_v3 = vld [vmem:[%s264_s25] sm:$0xff]  ;;  %vm313_vm0 = vcmask 130048   ;;  %s750_s23 = smov 16   ;;  %s301_s21 = scalar_lea.vmem [#allocation8], %s480_s29  ;;  %vm322_vm1 = vcmask 261248  }
  0x7c   : > { %718 = vsyncadd (%p1055_p11), [#allocation6], 4294967168  ;;  %v307_v1 = vld [vmem:[%s1031_s3] sm:$0xff]  ;;  %v315_v7 = vmul.f32 %v309_v3, %v306_v0  ;;  %s485_s6 = sshll.u32 %s737_s18, 7  ;;  %s339_s2 = sshll.u32 %s301_s21, 4  ;;  %s981_s2 = int_to_ptr.vmem [resolvable:$true] %s339_s2 }
  0x7d   : > { %v308_v2 = vld [vmem:[%s255_s13] sm:$0xff]  ;;  %v311_v6 = vmul.f32 %v309_v3, %v307_v1  ;;  %s979_s27 = scalar_lea.hbm %s1032_s4, %s485_s6  ;;  %s325_s10 = scalar_lea.sflag [#allocation4], %s955_s8 }
  0x7e   : > { %v310_v4 = vmul.f32 %v308_v2, %v306_v0  ;;  %v316_v5 = vmul.f32 %v308_v2, %v307_v1  ;;  %s655_s12 = scalar_lea.vmem %s981_s2, 128  ;;  %p1056_p0 = scmp.ne.s32.totalorder %s1050_s28, 0 }
  0x7f   : > { %p656_p12 = scmp.ne.s32.totalorder %s981_s2, %s655_s12  ;;  %s751_s18 = smov [#allocation8]  }
  0x80   : > { %v312_v8 = vsub.f32 %v310_v4, %v311_v6  ;;  %v317_v9 = vadd.f32 %v316_v5, %v315_v7  ;;  %s659_s26 = sshll.u32 %s751_s18, 4  ;;  %s660_s26 = int_to_ptr.vmem [resolvable:$false] %s659_s26 }
  0x81   : > { %p657_p5 = pnand %p656_p12, %p1056_p0  ;;  %s661_s29 = scalar_lea.vmem %s660_s26, 256 }
  0x82   : > { %319 = vrot.lane.b32.xlu0 %v317_v9, %s750_s23  ;;  %314 = vst.msk [vmem:[%s301_s21] sm:$0xff] %vm313_vm0, %v312_v8  ;;  %p662_p1 = scmp.lt.s32.totalorder %s981_s2, %s660_s26  ;;  %p663_p2 = scmp.lt.s32.totalorder %s661_s29, %s655_s12 }
  0x83   : > { %p658_p10 = pneg %p657_p5 }
  0x84   : > { %p664_p7 = por %p663_p2, %p662_p1 }
  0x86   : > { %p665_p4 = pnand %p664_p7, %p658_p10 }
  0xf4   : > { %v320_v10 = vpop.permute.xlu0 %319 }
  0xf5   : > { %323 = vst.msk [vmem:[%s301_s21] sm:$0xff] %vm322_vm1, %v320_v10 }
  0xf6   : > { %668 = shalt.err (!%p665_p4)
}
  0xf7   : > { %s669_s8 = scalar_lea.hbm %s979_s27, 128  ;;  %s673_s30 = scalar_lea.hbm %s1032_s4, 256 }
  0xf8   : > { %p670_p8 = scmp.ne.s32.totalorder %s979_s27, %s669_s8  ;;  %p674_p3 = scmp.lt.u32.totalorder %s979_s27, %s1032_s4 }
  0xf9   : > { %p675_p13 = scmp.lt.u32.totalorder %s673_s30, %s669_s8  ;;  %p677_p12 = scmp.lt.u32.totalorder %s669_s8, %s979_s27 }
  0xfa   : > { %p671_p9 = pnand %p670_p8, %p1056_p0 }
  0xfb   : > { %p676_p11 = por %p675_p13, %p674_p3 }
  0xfc   : > { %p672_p6 = pneg %p671_p9 }
  0xfd   : > { %p678_p5 = por %p677_p12, %p676_p11 }
  0xff   : > { %p679_p10 = pnand %p678_p5, %p672_p6 }
 0x101   : > { %682 = shalt.err (!%p679_p10)
}
 0x102   : > { %496 = dma.vmem_to_hbm [thread:$0]  (%p1056_p0), %s981_s2, 128, %s979_s27, %s325_s10  }
 0x103 PF: > { %s351_s14 = sand.u32 1, %s725_s15   ;;  %p1057_p1 = scmp.ne.s32.totalorder %s1042_s24, 0 }
 0x104   : > { %p1058_p2 = scmp.ge.s32.totalorder %s745_s20, 2  ;;  %s352_s9 = scalar_lea.sflag [#allocation4], %s351_s14 }
 0x106   : > { %p510_p7 = pnand %p1058_p2, %p1057_p1 }
 0x108   : > { %720 = dma.done.wait (!%p510_p7), %s352_s9, 128  }
 0x109   : > { %722 = vsyncadd (!%p510_p7), %s352_s9, 4294967168  ;;  %s23_s20 = sadd.s32 1, %s745_s20   ;;  %s1059_s18 = sld [smem:[#allocation13_spill]] }
 0x10a   : > { %p20_p4 = scmp.ge.s32.totalorder %s23_s20, 4   ;;  %s1060_s19 = sld [smem:[#allocation14_spill]] }
 0x10b   : > { %s1061_s15 = smov %s729_s16  ;;  %s1062_s16 = smov %s733_s17 }
 0x10c   : > { %s1063_s17 = smov %s882_s7  ;;  %22 = sbr.rel (!%p20_p4) target bundleno = 10 (0xa), region = 102 }
 0x113   :  { %357 = vsyncpa [#allocation3], 1 }
 0x114   :  { %359 = vsyncpa [#allocation3 + $0x1], 1 }
 0x115   :  { %360 = vsyncpa [#allocation6], 1 }
 0x116   :  { %362 = vsyncpa [#allocation6 + $0x1], 1 }
 0x117   :  { %363 = vsyncpa [#allocation4], 1 }
 0x118   :  { %365 = vsyncpa [#allocation4 + $0x1], 1 }

</bundles_post_ra>
